<compile_context>
chip_gen: v7x
topology: tpu7x:2x2x1
jax: 0.10.0
libtpu: 0.0.40
codegen_flags: <defaults>
</compile_context>

<pallas_src>
import jax
import jax.numpy as jnp
from jax.experimental import pallas as pl
from jax.experimental.pallas import tpu as pltpu

_LANE = 128
# Target footprint for double-buffered (x, pos, out) tiles; ~6 MiB/array-pair of
# streaming already hits ~85% of HBM roofline, so 12 MiB total is ample and
# leaves headroom on every generation (v7x physical VMEM is only 64 MiB).
_VMEM_FOOTPRINT_BUDGET = 12 * 1024 * 1024
# Scoped VMEM limit: above v5e's 16 MiB default, equal to v6e/v7x's default.
_VMEM_LIMIT_BYTES = 32 * 1024 * 1024


def _round_up(n, m):
    return ((n + m - 1) // m) * m


def _sublane_quantum(dtype):
    # Row-tile quantum per dtype packing: f32 -> 8, bf16 -> 16, int8/fp8 -> 32.
    return max(8, 32 // jnp.dtype(dtype).itemsize)


def _lane_width(n_pad, cap=2048):
    """Largest multiple-of-128 lane width (<= cap) dividing n_pad."""
    for lane in range(min(cap, n_pad), _LANE - 1, -_LANE):
        if n_pad % lane == 0:
            return lane
    return _LANE


def _choose_tiles(R, C, per_elem_bytes, row_quantum):
    """Pick (row_tile, col_tile): 2 buffers * 3 tiles stay under the VMEM budget."""
    max_elems = max(_VMEM_FOOTPRINT_BUDGET // (2 * per_elem_bytes),
                    row_quantum * _LANE)

    # Column tile: keep the full (lane-dense) width when it fits with at least
    # `row_quantum` rows; otherwise a large multiple of 128 lanes.
    if C * row_quantum <= max_elems:
        tc = C
    else:
        tc = max(_LANE, (max_elems // row_quantum) // _LANE * _LANE)
        tc = min(tc, C)
        while C % tc != 0 and tc > _LANE:   # prefer an evenly dividing col tile
            tc -= _LANE

    # Row tile from the remaining budget, multiple of the sublane quantum.
    tr = max(row_quantum, (max_elems // tc) // row_quantum * row_quantum)
    # Give v7x's two TensorCores at least two row tiles when the array allows it.
    if R > row_quantum:
        tr = min(tr, _round_up(pl.cdiv(R, 2), row_quantum))
    tr = min(tr, _round_up(R, row_quantum))
    if R < row_quantum:
        tr = R                              # full-extent block for tiny arrays
    return tr, tc


def _add_kernel(x_ref, p_ref, o_ref):
    # Pure VPU streaming add; table tile explicitly cast to the activation
    # dtype so the store happens in x.dtype (no silent f32 promotion).
    o_ref[...] = x_ref[...] + p_ref[...].astype(x_ref.dtype)


def _pallas_add(x2d, pos2d, out_rows, out_cols, bytes_accessed, flops):
    """Tiled elementwise add of x2d and the matching row/col blocks of pos2d."""
    R, C = out_rows, out_cols
    per_elem = (jnp.dtype(x2d.dtype).itemsize
                + jnp.dtype(pos2d.dtype).itemsize
                + jnp.dtype(x2d.dtype).itemsize)
    tr, tc = _choose_tiles(R, C, per_elem, _sublane_quantum(x2d.dtype))
    grid = (pl.cdiv(R, tr), pl.cdiv(C, tc))
    spec = pl.BlockSpec((tr, tc), lambda i, j: (i, j))

    return pl.pallas_call(
        _add_kernel,
        out_shape=jax.ShapeDtypeStruct((R, C), x2d.dtype),
        grid_spec=pltpu.PrefetchScalarGridSpec(
            num_scalar_prefetch=0,
            grid=grid,
            in_specs=[spec, spec],   # same row/col block of x and of the table
            out_specs=spec,
        ),
        compiler_params=pltpu.CompilerParams(
            dimension_semantics=("parallel", "parallel"),
            vmem_limit_bytes=_VMEM_LIMIT_BYTES,
        ),
        cost_estimate=pl.CostEstimate(
            flops=flops, transcendentals=0, bytes_accessed=bytes_accessed
        ),
    )(x2d, pos2d)


def learned_positional_embedding(x, pos_table):
    """x: (S, D) activations; pos_table: (max_len, D), S <= max_len. Returns (S, D)."""
    S, D = x.shape
    max_len, D2 = pos_table.shape
    assert D == D2, "d_model mismatch between x and embedding table"
    assert S <= max_len, "sequence length exceeds max_len of the embedding table"

    per_elem = (2 * jnp.dtype(x.dtype).itemsize
                + jnp.dtype(pos_table.dtype).itemsize)
    flops = S * D
    bytes_accessed = S * D * per_elem

    if D >= _LANE and D % _LANE == 0:
        # Natural lane-dense layout: pass the full table; BlockSpec addresses
        # row block i of the table == row block i of x (positions = arange(S)),
        # so no gather and no wrapper-side copy of the table is needed.
        return _pallas_add(x, pos_table, S, D, bytes_accessed, flops)

    # Narrow / misaligned d_model (e.g. D=32): flatten x and the first S table
    # rows into a lane-dense slab so stores are unmasked full-lane vst.
    n = S * D
    n_pad = _round_up(n, _LANE)
    pad = n_pad - n
    x_flat = jnp.pad(x.reshape(-1), (0, pad))
    p_flat = jnp.pad(pos_table[:S].reshape(-1), (0, pad))
    C = _lane_width(n_pad)
    R = n_pad // C
    out = _pallas_add(x_flat.reshape(R, C), p_flat.reshape(R, C),
                      R, C, bytes_accessed, flops)
    return out.reshape(-1)[:n].reshape(S, D)


def reference(x, pos_table):
    """Pure-JAX reference mirroring the PyTorch forward."""
    S = x.shape[0]
    return x + pos_table[:S, :].astype(x.dtype)


if __name__ == "__main__":
    key = jax.random.PRNGKey(0)

    # Demo shape from the spec: seq tokens of width d_model, table of max_len rows.
    seq, d_model, max_len = 8, 32, 50
    kx, kp, kx2, kp2 = jax.random.split(key, 4)
    x = jax.random.normal(kx, (seq, d_model), dtype=jnp.float32)
    pos_table = jax.random.normal(kp, (max_len, d_model), dtype=jnp.float32)

    out = jax.block_until_ready(learned_positional_embedding(x, pos_table))
    ref = reference(x, pos_table)
    assert out.shape == (seq, d_model)
    assert out.dtype == x.dtype
    assert jnp.allclose(out, ref, atol=1e-6, rtol=1e-6), "mismatch (lane-dense path)"

    # Also exercise the natural 2D path (d_model a multiple of 128).
    seq2, d_model2, max_len2 = 16, 128, 64
    x2 = jax.random.normal(kx2, (seq2, d_model2), dtype=jnp.float32)
    pos_table2 = jax.random.normal(kp2, (max_len2, d_model2), dtype=jnp.float32)
    out2 = jax.block_until_ready(learned_positional_embedding(x2, pos_table2))
    ref2 = reference(x2, pos_table2)
    assert out2.shape == (seq2, d_model2)
    assert jnp.allclose(out2, ref2, atol=1e-6, rtol=1e-6), "mismatch (2D path)"

    print("KERNEL_OK")
</pallas_src>

<mosaic_0001>
module attributes {stable_mosaic.version = 11 : i64} {
  func.func @_add_kernel(%arg0: i32, %arg1: i32, %arg2: memref<1x256xf32, #tpu.memory_space<vmem>>, %arg3: memref<1x256xf32, #tpu.memory_space<vmem>>, %arg4: memref<1x256xf32, #tpu.memory_space<vmem>>) attributes {dimension_semantics = [#tpu.dimension_semantics<parallel>, #tpu.dimension_semantics<parallel>], iteration_bounds = array<i64: 1, 1>, scalar_prefetch = 0 : i64, scratch_operands = 0 : i64, tpu.core_type = #tpu.core_type<tc>, window_params = [{transform_indices = @transform_0, window_bounds = array<i64: 1, 256>}, {transform_indices = @transform_1, window_bounds = array<i64: 1, 256>}, {transform_indices = @transform_2, window_bounds = array<i64: 1, 256>}]} {
    %c0 = arith.constant 0 : index
    %c0_0 = arith.constant 0 : index
    %0 = vector.load %arg2[%c0, %c0_0] : memref<1x256xf32, #tpu.memory_space<vmem>>, vector<1x256xf32>
    %c0_1 = arith.constant 0 : index
    %c0_2 = arith.constant 0 : index
    %1 = vector.load %arg3[%c0_1, %c0_2] : memref<1x256xf32, #tpu.memory_space<vmem>>, vector<1x256xf32>
    %2 = arith.addf %0, %1 : vector<1x256xf32>
    %c0_3 = arith.constant 0 : index
    %c0_4 = arith.constant 0 : index
    %3 = vector.load %arg4[%c0_3, %c0_4] : memref<1x256xf32, #tpu.memory_space<vmem>>, vector<1x256xf32>
    tpu.vector_store %arg4[%c0_3, %c0_4], %2 {strides = array<i32>} : memref<1x256xf32, #tpu.memory_space<vmem>>, vector<1x256xf32>,
    return
  }
  func.func @transform_0(%arg0: i32, %arg1: i32) -> (i32, i32) {
    %c0_i32 = arith.constant 0 : i32
    return %arg0, %arg1 : i32, i32
  }
  func.func @transform_1(%arg0: i32, %arg1: i32) -> (i32, i32) {
    %c0_i32 = arith.constant 0 : i32
    return %arg0, %arg1 : i32, i32
  }
  func.func @transform_2(%arg0: i32, %arg1: i32) -> (i32, i32) {
    %c0_i32 = arith.constant 0 : i32
    return %arg0, %arg1 : i32, i32
  }
}

</mosaic_0001>

<bundles_post_ra>
// kernel: tpu_custom_call.1
= control target key start
LH: loop header
LB: loop body
LE: loop exit
PB: predicated region body
PF: predicated region fallthrough
CT: control target
= control target key end

     0   :  { %7 = vsyncpa [#allocation3], 0  ;;  %s141_s0 = inlined_call_operand.hbm [shape: f32[1,256], index: 0, kind: input, shape index: {}]   ;;  %s142_s1 = inlined_call_operand.vmem [shape: f32[1,256], index: 1, kind: input, shape index: {}]   ;;  %s143_s2 = inlined_call_operand.hbm [shape: f32[1,256], index: 2, kind: output, shape index: {}]  }
   0x1   :  { %8 = vsyncpa [#allocation4], 0  ;;  %s97_s9 = smov [#allocation2]   ;;  %s49_s13 = scalar_lea.hbm %s141_s0, 32 }
   0x2   :  { %s15_s10 = sshll.u32 %s97_s9, 4  ;;  %p50_p0 = scmp.ne.s32.totalorder %s141_s0, %s49_s13  ;;  %s16_s10 = int_to_ptr.vmem [resolvable:$true] %s15_s10 }
   0x3   :  { %p53_p1 = scmp.lt.u32.totalorder %s49_s13, %s141_s0 }
   0x5   :  { %p55_p2 = pnand %p53_p1, %p50_p0 }
   0x7   :  { %58 = shalt.err (!%p55_p2)
}
   0x8   :  { %s59_s18 = scalar_lea.vmem %s16_s10, 32  ;;  %p64_p4 = scmp.lt.s32.totalorder %s16_s10, %s16_s10 }
   0x9   :  { %p60_p3 = scmp.ne.s32.totalorder %s16_s10, %s59_s18  ;;  %p65_p5 = scmp.lt.s32.totalorder %s59_s18, %s59_s18 }
   0xb   :  { %p66_p6 = por %p65_p5, %p64_p4 }
   0xd   :  { %p67_p7 = pnand %p66_p6, %p60_p3 }
   0xf   :  { %70 = shalt.err (!%p67_p7)
}
  0x10   :  { %18 = dma.hbm_to_vmem [thread:$0]  %s141_s0, 32, %s16_s10, [#allocation3]  }
  0x11   :  { %93 = dma.done.wait [#allocation3], 32  }
  0x12   :  { %94 = vsyncadd [#allocation3], 4294967264  ;;  %v27_v0 = vlaneseq  ;;  %s98_s21 = smov [#allocation5]   ;;  %v24_v1 = vld [vmem:[#allocation2] sm:$0x3] }
  0x13   :  { %s38_s22 = sshll.u32 %s98_s21, 4  ;;  %v25_v2 = vld [vmem:[%s142_s1] sm:$0x3]  ;;  %s39_s22 = int_to_ptr.vmem [resolvable:$true] %s38_s22 }
  0x14   :  { %vm29_vm0 = vcmp.lt.s32.totalorder %v27_v0, 256  ;;  %v26_v3 = vadd.f32 %v25_v2, %v24_v1  ;;  %s71_s25 = scalar_lea.vmem %s39_s22, 32  ;;  %p76_p9 = scmp.lt.s32.totalorder %s39_s22, %s39_s22 }
  0x15   :  { %p72_p8 = scmp.ne.s32.totalorder %s39_s22, %s71_s25  ;;  %p77_p10 = scmp.lt.s32.totalorder %s71_s25, %s71_s25 }
  0x16   :  { %31 = vst.msk [vmem:[#allocation5] sm:$0x3] %vm29_vm0, %v26_v3 }
  0x17   :  { %p78_p11 = por %p77_p10, %p76_p9 }
  0x19   :  { %p79_p12 = pnand %p78_p11, %p72_p8 }
  0x1b   :  { %82 = shalt.err (!%p79_p12)
}
  0x1c   :  { %s83_s27 = scalar_lea.hbm %s143_s2, 32 }
  0x1d   :  { %p84_p13 = scmp.ne.s32.totalorder %s143_s2, %s83_s27  ;;  %p87_p0 = scmp.lt.u32.totalorder %s83_s27, %s143_s2 }
  0x1f   :  { %p89_p1 = pnand %p87_p0, %p84_p13 }
  0x21   :  { %92 = shalt.err (!%p89_p1)
}
  0x22   :  { %41 = dma.vmem_to_hbm [thread:$0]  %s39_s22, 32, %s143_s2, [#allocation4]  }
  0x23   :  { %95 = dma.done.wait [#allocation4], 32  }
  0x24   :  { %96 = vsyncadd [#allocation4], 4294967264 }
  0x25   :  { %45 = vsyncpa [#allocation3], 1 }
  0x26   :  { %46 = vsyncpa [#allocation4], 1 }

</bundles_post_ra>
